<compile_context>
chip_gen: v7x
topology: tpu7x:2x2x1
jax: 0.10.0
libtpu: 0.0.40
codegen_flags: <defaults>
</compile_context>

<pallas_src>
import functools

import jax
import jax.numpy as jnp
from jax.experimental import pallas as pl
from jax.experimental.pallas import tpu as pltpu


def _round_up(x, m):
    return (x + m - 1) // m * m


# ---------------------------------------------------------------------------
# Kernel 1: per grid step handle nb images. Build the im2col slab in VMEM from
# flat lane-shifted windows of a lane-aligned padded row buffer, hit it with a
# single MXU matmul (Cout, KK*Cpad) @ (KK*Cpad, nb*HW), emit lane-dense y and
# packed per-step channel sum / sum-of-squares for the BatchNorm stats.
# ---------------------------------------------------------------------------
def conv_stats_kernel(x_ref, w_ref, mask_ref, y_ref, stat_ref, xpad_ref, slab_ref,
                      *, H, W, K, Cpad, pad, nb, PAL):
    HW = H * W
    P = pad * (W + 1)          # flat-index halo that covers all K*K tap shifts

    # Zero only the two halo column ranges (the interior is overwritten below).
    zero_halo = jnp.zeros((nb, Cpad, P), xpad_ref.dtype)
    xpad_ref[:, :, PAL - P:PAL] = zero_halo
    xpad_ref[:, :, PAL + HW:PAL + HW + P] = zero_halo
    # Lane-aligned interior copy (PAL is a multiple of 128).
    xpad_ref[:, :, PAL:PAL + HW] = x_ref[...].astype(xpad_ref.dtype)

    # Hoist the (at most 2*pad distinct) column-wrap masks out of the tap loops
    # and broadcast them once.
    mrow = {}
    for dw in range(-pad, pad + 1):
        if dw == 0:
            continue
        r = dw + pad if dw < 0 else pad - 1 + dw
        mrow[dw] = jnp.broadcast_to(mask_ref[r:r + 1, :], (Cpad, HW))

    # Build the im2col slab.  Rows that fall off the image vertically land in the
    # zero halo; horizontal wrap-around is killed by the precomputed column mask.
    # TODO(synk): for Cin >= ~128 skip the slab and accumulate 9 direct per-tap
    # dots from xpad_ref instead (slab write/read traffic becomes pure overhead).
    for b in range(nb):
        col = b * HW
        for kh in range(K):
            for kw in range(K):
                dh, dw = kh - pad, kw - pad
                d = dh * W + dw
                win = xpad_ref[b, :, PAL + d:PAL + d + HW]      # (Cpad, HW)
                if dw != 0:
                    win = win * mrow[dw]
                r = (kh * K + kw) * Cpad                        # sublane aligned
                slab_ref[r:r + Cpad, col:col + HW] = win        # lane aligned col

    # Single MXU matmul with f32 accumulation.
    acc = jnp.dot(w_ref[...], slab_ref[...], preferred_element_type=jnp.float32)

    for b in range(nb):
        y_ref[b] = acc[:, b * HW:(b + 1) * HW].astype(y_ref.dtype)

    # Packed per-step stats: one small DMA instead of two.
    stat_ref[0, :, 0:1] = jnp.sum(acc, axis=1, keepdims=True)
    stat_ref[0, :, 1:2] = jnp.sum(acc * acc, axis=1, keepdims=True)


# ---------------------------------------------------------------------------
# Kernel 2: fused BatchNorm affine (per-channel scale/shift) + ReLU, lane-dense,
# multiple images per grid step, written directly in NCHW-compatible layout.
# ---------------------------------------------------------------------------
def bn_relu_kernel(y_ref, scale_ref, shift_ref, o_ref):
    y = y_ref[...].astype(jnp.float32)               # (nb, Cout, HW)
    o = y * scale_ref[...] + shift_ref[...]          # (Cout, 1) broadcasts
    o_ref[...] = jnp.maximum(o, 0.0).astype(o_ref.dtype)


def conv_block_forward(x_nchw, w_oihw, gamma, beta, *, eps=1e-5, padding=1,
                       mxu_dtype=jnp.bfloat16):
    """ConvBlock forward: conv(KxK, s=1, pad, no bias) -> BN(train) -> ReLU."""
    N, Cin, H, W = x_nchw.shape
    Cout, Cin2, K, K2 = w_oihw.shape
    assert Cin2 == Cin and K2 == K
    assert 2 * padding == K - 1 and padding >= 1, "stride=1 'same' conv of ConvBlock"
    HW = H * W
    KK = K * K
    P = padding * (W + 1)
    PAL = _round_up(max(P, 1), 128)                  # lane-aligned interior start
    PBUF = _round_up(PAL + HW + P, 128)

    x_dtype = x_nchw.dtype
    mb = jnp.dtype(mxu_dtype).itemsize
    xb = jnp.dtype(x_dtype).itemsize
    sub = 16 if mb == 2 else 8
    Cpad = _round_up(Cin, sub)                       # sublane-aligned tap stores

    # Layout plumbing: reshapes are free; channel zero-pad is a no-op when Cin is
    # already a sublane multiple (padded channels contract to zero).
    xf = x_nchw.reshape(N, Cin, HW)
    if Cpad != Cin:
        xf = jnp.pad(xf, ((0, 0), (0, Cpad - Cin), (0, 0)))
    wm = jnp.transpose(w_oihw, (0, 2, 3, 1)).reshape(Cout, KK, Cin)
    if Cpad != Cin:
        wm = jnp.pad(wm, ((0, 0), (0, 0), (0, Cpad - Cin)))
    wm = wm.reshape(Cout, KK * Cpad).astype(mxu_dtype)

    # Hoisted column-wrap masks for dw in {-pad..-1, 1..pad}.
    w_idx = jnp.tile(jnp.arange(W, dtype=jnp.int32), H)            # (HW,)
    rows = [((w_idx + dw >= 0) & (w_idx + dw < W))
            for dw in list(range(-padding, 0)) + list(range(1, padding + 1))]
    masks = jnp.stack(rows).astype(mxu_dtype)                       # (2*pad, HW)

    # VMEM budgeting: pick nb (images per step), keep the grid >= 2 steps for
    # v7x megacore, and raise the scoped-VMEM limit (v5e default is 16 MiB).
    budget = 36 * 1024 * 1024
    vmem_limit = 48 * 1024 * 1024
    per_img1 = (2 * Cpad * HW * xb          # double-buffered x block
                + 2 * Cout * HW * xb        # double-buffered y block
                + Cpad * PBUF * mb          # xpad scratch
                + KK * Cpad * HW * mb)      # im2col slab scratch
    fixed1 = 2 * (Cout * KK * Cpad + 2 * padding * HW) * mb + 4 * Cout * 2 * 4

    def pick_nb(per_img, fixed):
        for nb in range(N, 0, -1):
            if N % nb:
                continue
            if N >= 2 and N // nb < 2:      # keep >= 2 grid steps (v7x: 2 TCs)
                continue
            if fixed + nb * per_img <= budget:
                return nb
        return 1

    nb1 = pick_nb(per_img1, fixed1)
    n1 = N // nb1
    # TODO(synk): if even nb=1 blows the VMEM budget (huge H*W on v7x), tile H*W
    # across a second grid axis with a halo exchange.

    kern1 = functools.partial(conv_stats_kernel, H=H, W=W, K=K, Cpad=Cpad,
                              pad=padding, nb=nb1, PAL=PAL)
    y, stats = pl.pallas_call(
        kern1,
        out_shape=(
            jax.ShapeDtypeStruct((N, Cout, HW), x_dtype),      # y in input dtype
            jax.ShapeDtypeStruct((n1, Cout, 2), jnp.float32),  # packed sum / ssq
        ),
        grid_spec=pltpu.PrefetchScalarGridSpec(
            num_scalar_prefetch=0,
            grid=(n1,),
            in_specs=[
                pl.BlockSpec((nb1, Cpad, HW), lambda s: (s, 0, 0)),
                pl.BlockSpec((Cout, KK * Cpad), lambda s: (0, 0)),
                pl.BlockSpec((2 * padding, HW), lambda s: (0, 0)),
            ],
            out_specs=[
                pl.BlockSpec((nb1, Cout, HW), lambda s: (s, 0, 0)),
                pl.BlockSpec((1, Cout, 2), lambda s: (s, 0, 0)),
            ],
            scratch_shapes=[
                pltpu.VMEM((nb1, Cpad, PBUF), mxu_dtype),      # flat-padded images
                pltpu.VMEM((KK * Cpad, nb1 * HW), mxu_dtype),  # im2col slab
            ],
        ),
        compiler_params=pltpu.CompilerParams(
            dimension_semantics=("parallel",), vmem_limit_bytes=vmem_limit),
    )(xf, wm, masks)

    # Tiny per-channel parameter glue (training-mode BN: biased var over N,H,W).
    # TODO(synk): E[x^2]-mean^2 can cancel for poorly-centered activations; a
    # shifted/Welford reduction would need a different stats layout.
    cnt = jnp.float32(N * HW)
    tot = jnp.sum(stats, axis=0)                               # (Cout, 2)
    mean = tot[:, 0:1] / cnt
    var = jnp.maximum(tot[:, 1:2] / cnt - mean * mean, 0.0)
    inv = 1.0 / jnp.sqrt(var + jnp.float32(eps))
    scale = gamma.reshape(Cout, 1).astype(jnp.float32) * inv
    shift = beta.reshape(Cout, 1).astype(jnp.float32) - mean * scale

    # Pass 2: pure HBM-bandwidth BN+ReLU; nb from the same byte budget.
    per_img2 = 2 * Cout * HW * (xb + xb)       # double-buffered in + out blocks
    nb2 = pick_nb(per_img2, 0)
    out_flat = pl.pallas_call(
        bn_relu_kernel,
        out_shape=jax.ShapeDtypeStruct((N, Cout, HW), x_dtype),
        grid_spec=pltpu.PrefetchScalarGridSpec(
            num_scalar_prefetch=0,
            grid=(N // nb2,),
            in_specs=[
                pl.BlockSpec((nb2, Cout, HW), lambda i: (i, 0, 0)),
                pl.BlockSpec((Cout, 1), lambda i: (0, 0)),
                pl.BlockSpec((Cout, 1), lambda i: (0, 0)),
            ],
            out_specs=pl.BlockSpec((nb2, Cout, HW), lambda i: (i, 0, 0)),
        ),
        compiler_params=pltpu.CompilerParams(
            dimension_semantics=("parallel",), vmem_limit_bytes=vmem_limit),
    )(y, scale, shift)

    return out_flat.reshape(N, Cout, H, W)     # free reshape: already NCHW layout


def reference_forward(x, w, gamma, beta, eps=1e-5, padding=1):
    """Pure-JAX reference (PyTorch ConvBlock semantics, BN in training mode)."""
    y = jax.lax.conv_general_dilated(
        x, w, window_strides=(1, 1),
        padding=((padding, padding), (padding, padding)),
        dimension_numbers=("NCHW", "OIHW", "NCHW"))
    mean = jnp.mean(y, axis=(0, 2, 3), keepdims=True)
    var = jnp.var(y, axis=(0, 2, 3), keepdims=True)
    yhat = (y - mean) / jnp.sqrt(var + eps)
    yhat = yhat * gamma.reshape(1, -1, 1, 1) + beta.reshape(1, -1, 1, 1)
    return jnp.maximum(yhat, 0.0)


if __name__ == "__main__":
    # ConvBlock(in_channels=4, out_channels=8, kernel=3, padding=1) at small shapes.
    N, Cin, H, W = 4, 4, 16, 16
    Cout, K = 8, 3

    key = jax.random.PRNGKey(0)
    kx, kw, kg, kb = jax.random.split(key, 4)
    x = jax.random.normal(kx, (N, Cin, H, W), dtype=jnp.float32)
    w = 0.1 * jax.random.normal(kw, (Cout, Cin, K, K), dtype=jnp.float32)  # bias=False
    gamma = 1.0 + 0.1 * jax.random.normal(kg, (Cout,), dtype=jnp.float32)
    beta = 0.05 * jax.random.normal(kb, (Cout,), dtype=jnp.float32)

    ref = reference_forward(x, w, gamma, beta)

    # Exact path (f32 MXU operands) — tight tolerance vs the f32 reference.
    out_f32 = jax.block_until_ready(
        conv_block_forward(x, w, gamma, beta, mxu_dtype=jnp.float32))
    assert out_f32.shape == (N, Cout, H, W)
    assert jnp.allclose(out_f32, ref, rtol=1e-4, atol=1e-4), "f32 path mismatch"

    # Default fast path (bf16 MXU operands, f32 accumulation) — looser tolerance.
    out_bf16 = jax.block_until_ready(conv_block_forward(x, w, gamma, beta))
    assert out_bf16.shape == (N, Cout, H, W)
    assert jnp.allclose(out_bf16, ref, rtol=5e-2, atol=5e-2), "bf16 path mismatch"

    print("KERNEL_OK")
</pallas_src>

<mosaic_0001>
module attributes {stable_mosaic.version = 11 : i64} {
  func.func @conv_stats_kernel(%arg0: i32, %arg1: memref<2x8x256xf32, #tpu.memory_space<vmem>>, %arg2: memref<8x72xf32, #tpu.memory_space<vmem>>, %arg3: memref<2x256xf32, #tpu.memory_space<vmem>>, %arg4: memref<2x8x256xf32, #tpu.memory_space<vmem>>, %arg5: memref<1x8x2xf32, #tpu.memory_space<vmem>>, %arg6: memref<2x8x512xf32, #tpu.memory_space<vmem>>, %arg7: memref<72x512xf32, #tpu.memory_space<vmem>>) attributes {dimension_semantics = [#tpu.dimension_semantics<parallel>], iteration_bounds = array<i64: 2>, scalar_prefetch = 0 : i64, scratch_operands = 2 : i64, tpu.core_type = #tpu.core_type<tc>, window_params = [{transform_indices = @transform_0, window_bounds = array<i64: 2, 8, 256>}, {pipeline_mode = #tpu.pipeline_mode<synchronous>, transform_indices = @transform_1, window_bounds = array<i64: 8, 72>}, {pipeline_mode = #tpu.pipeline_mode<synchronous>, transform_indices = @transform_2, window_bounds = array<i64: 2, 256>}, {transform_indices = @transform_3, window_bounds = array<i64: 2, 8, 256>}, {transform_indices = @transform_4, window_bounds = array<i64: 1, 8, 2>}]} {
    %cst = arith.constant 0.000000e+00 : f32
    %0 = vector.broadcast %cst : f32 to vector<2x8x17xf32>
    %c0 = arith.constant 0 : index
    %c0_0 = arith.constant 0 : index
    %c111 = arith.constant 111 : index
    %1 = vector.load %arg6[%c0, %c0_0, %c111] : memref<2x8x512xf32, #tpu.memory_space<vmem>>, vector<2x8x17xf32>
    tpu.vector_store %arg6[%c0, %c0_0, %c111], %0 {strides = array<i32>} : memref<2x8x512xf32, #tpu.memory_space<vmem>>, vector<2x8x17xf32>,
    %c0_1 = arith.constant 0 : index
    %c0_2 = arith.constant 0 : index
    %c384 = arith.constant 384 : index
    %2 = vector.load %arg6[%c0_1, %c0_2, %c384] : memref<2x8x512xf32, #tpu.memory_space<vmem>>, vector<2x8x17xf32>
    tpu.vector_store %arg6[%c0_1, %c0_2, %c384], %0 {strides = array<i32>} : memref<2x8x512xf32, #tpu.memory_space<vmem>>, vector<2x8x17xf32>,
    %c0_3 = arith.constant 0 : index
    %c0_4 = arith.constant 0 : index
    %c0_5 = arith.constant 0 : index
    %3 = vector.load %arg1[%c0_3, %c0_4, %c0_5] : memref<2x8x256xf32, #tpu.memory_space<vmem>>, vector<2x8x256xf32>
    %c0_6 = arith.constant 0 : index
    %c0_7 = arith.constant 0 : index
    %c128 = arith.constant 128 : index
    %4 = vector.load %arg6[%c0_6, %c0_7, %c128] : memref<2x8x512xf32, #tpu.memory_space<vmem>>, vector<2x8x256xf32>
    tpu.vector_store %arg6[%c0_6, %c0_7, %c128], %3 {strides = array<i32>} : memref<2x8x512xf32, #tpu.memory_space<vmem>>, vector<2x8x256xf32>,
    %c0_8 = arith.constant 0 : index
    %c0_9 = arith.constant 0 : index
    %5 = vector.load %arg3[%c0_8, %c0_9] : memref<2x256xf32, #tpu.memory_space<vmem>>, vector<1x256xf32>
    %6 = vector.shape_cast %5 : vector<1x256xf32> to vector<1x256xf32>
    %7 = vector.broadcast %6 : vector<1x256xf32> to vector<8x256xf32>
    %c1 = arith.constant 1 : index
    %c0_10 = arith.constant 0 : index
    %8 = vector.load %arg3[%c1, %c0_10] : memref<2x256xf32, #tpu.memory_space<vmem>>, vector<1x256xf32>
    %9 = vector.shape_cast %8 : vector<1x256xf32> to vector<1x256xf32>
    %10 = vector.broadcast %9 : vector<1x256xf32> to vector<8x256xf32>
    %c0_11 = arith.constant 0 : index
    %c0_12 = arith.constant 0 : index
    %c111_13 = arith.constant 111 : index
    %11 = vector.load %arg6[%c0_11, %c0_12, %c111_13] : memref<2x8x512xf32, #tpu.memory_space<vmem>>, vector<1x8x256xf32>
    %12 = vector.shape_cast %11 : vector<1x8x256xf32> to vector<8x256xf32>
    %13 = arith.mulf %12, %7 : vector<8x256xf32>
    %c0_14 = arith.constant 0 : index
    %c0_15 = arith.constant 0 : index
    %14 = vector.load %arg7[%c0_14, %c0_15] : memref<72x512xf32, #tpu.memory_space<vmem>>, vector<8x256xf32>
    tpu.vector_store %arg7[%c0_14, %c0_15], %13 {strides = array<i32>} : memref<72x512xf32, #tpu.memory_space<vmem>>, vector<8x256xf32>,
    %c0_16 = arith.constant 0 : index
    %c0_17 = arith.constant 0 : index
    %c112 = arith.constant 112 : index
    %15 = vector.load %arg6[%c0_16, %c0_17, %c112] : memref<2x8x512xf32, #tpu.memory_space<vmem>>, vector<1x8x256xf32>
    %16 = vector.shape_cast %15 : vector<1x8x256xf32> to vector<8x256xf32>
    %c8 = arith.constant 8 : index
    %c0_18 = arith.constant 0 : index
    %17 = vector.load %arg7[%c8, %c0_18] : memref<72x512xf32, #tpu.memory_space<vmem>>, vector<8x256xf32>
    tpu.vector_store %arg7[%c8, %c0_18], %16 {strides = array<i32>} : memref<72x512xf32, #tpu.memory_space<vmem>>, vector<8x256xf32>,
    %c0_19 = arith.constant 0 : index
    %c0_20 = arith.constant 0 : index
    %c113 = arith.constant 113 : index
    %18 = vector.load %arg6[%c0_19, %c0_20, %c113] : memref<2x8x512xf32, #tpu.memory_space<vmem>>, vector<1x8x256xf32>
    %19 = vector.shape_cast %18 : vector<1x8x256xf32> to vector<8x256xf32>
    %20 = arith.mulf %19, %10 : vector<8x256xf32>
    %c16 = arith.constant 16 : index
    %c0_21 = arith.constant 0 : index
    %21 = vector.load %arg7[%c16, %c0_21] : memref<72x512xf32, #tpu.memory_space<vmem>>, vector<8x256xf32>
    tpu.vector_store %arg7[%c16, %c0_21], %20 {strides = array<i32>} : memref<72x512xf32, #tpu.memory_space<vmem>>, vector<8x256xf32>,
    %c0_22 = arith.constant 0 : index
    %c0_23 = arith.constant 0 : index
    %c127 = arith.constant 127 : index
    %22 = vector.load %arg6[%c0_22, %c0_23, %c127] : memref<2x8x512xf32, #tpu.memory_space<vmem>>, vector<1x8x256xf32>
    %23 = vector.shape_cast %22 : vector<1x8x256xf32> to vector<8x256xf32>
    %24 = arith.mulf %23, %7 : vector<8x256xf32>
    %c24 = arith.constant 24 : index
    %c0_24 = arith.constant 0 : index
    %25 = vector.load %arg7[%c24, %c0_24] : memref<72x512xf32, #tpu.memory_space<vmem>>, vector<8x256xf32>
    tpu.vector_store %arg7[%c24, %c0_24], %24 {strides = array<i32>} : memref<72x512xf32, #tpu.memory_space<vmem>>, vector<8x256xf32>,
    %c0_25 = arith.constant 0 : index
    %c0_26 = arith.constant 0 : index
    %c128_27 = arith.constant 128 : index
    %26 = vector.load %arg6[%c0_25, %c0_26, %c128_27] : memref<2x8x512xf32, #tpu.memory_space<vmem>>, vector<1x8x256xf32>
    %27 = vector.shape_cast %26 : vector<1x8x256xf32> to vector<8x256xf32>
    %c32 = arith.constant 32 : index
    %c0_28 = arith.constant 0 : index
    %28 = vector.load %arg7[%c32, %c0_28] : memref<72x512xf32, #tpu.memory_space<vmem>>, vector<8x256xf32>
    tpu.vector_store %arg7[%c32, %c0_28], %27 {strides = array<i32>} : memref<72x512xf32, #tpu.memory_space<vmem>>, vector<8x256xf32>,
    %c0_29 = arith.constant 0 : index
    %c0_30 = arith.constant 0 : index
    %c129 = arith.constant 129 : index
    %29 = vector.load %arg6[%c0_29, %c0_30, %c129] : memref<2x8x512xf32, #tpu.memory_space<vmem>>, vector<1x8x256xf32>
    %30 = vector.shape_cast %29 : vector<1x8x256xf32> to vector<8x256xf32>
    %31 = arith.mulf %30, %10 : vector<8x256xf32>
    %c40 = arith.constant 40 : index
    %c0_31 = arith.constant 0 : index
    %32 = vector.load %arg7[%c40, %c0_31] : memref<72x512xf32, #tpu.memory_space<vmem>>, vector<8x256xf32>
    tpu.vector_store %arg7[%c40, %c0_31], %31 {strides = array<i32>} : memref<72x512xf32, #tpu.memory_space<vmem>>, vector<8x256xf32>,
    %c0_32 = arith.constant 0 : index
    %c0_33 = arith.constant 0 : index
    %c143 = arith.constant 143 : index
    %33 = vector.load %arg6[%c0_32, %c0_33, %c143] : memref<2x8x512xf32, #tpu.memory_space<vmem>>, vector<1x8x256xf32>
    %34 = vector.shape_cast %33 : vector<1x8x256xf32> to vector<8x256xf32>
    %35 = arith.mulf %34, %7 : vector<8x256xf32>
    %c48 = arith.constant 48 : index
    %c0_34 = arith.constant 0 : index
    %36 = vector.load %arg7[%c48, %c0_34] : memref<72x512xf32, #tpu.memory_space<vmem>>, vector<8x256xf32>
    tpu.vector_store %arg7[%c48, %c0_34], %35 {strides = array<i32>} : memref<72x512xf32, #tpu.memory_space<vmem>>, vector<8x256xf32>,
    %c0_35 = arith.constant 0 : index
    %c0_36 = arith.constant 0 : index
    %c144 = arith.constant 144 : index
    %37 = vector.load %arg6[%c0_35, %c0_36, %c144] : memref<2x8x512xf32, #tpu.memory_space<vmem>>, vector<1x8x256xf32>
    %38 = vector.shape_cast %37 : vector<1x8x256xf32> to vector<8x256xf32>
    %c56 = arith.constant 56 : index
    %c0_37 = arith.constant 0 : index
    %39 = vector.load %arg7[%c56, %c0_37] : memref<72x512xf32, #tpu.memory_space<vmem>>, vector<8x256xf32>
    tpu.vector_store %arg7[%c56, %c0_37], %38 {strides = array<i32>} : memref<72x512xf32, #tpu.memory_space<vmem>>, vector<8x256xf32>,
    %c0_38 = arith.constant 0 : index
    %c0_39 = arith.constant 0 : index
    %c145 = arith.constant 145 : index
    %40 = vector.load %arg6[%c0_38, %c0_39, %c145] : memref<2x8x512xf32, #tpu.memory_space<vmem>>, vector<1x8x256xf32>
    %41 = vector.shape_cast %40 : vector<1x8x256xf32> to vector<8x256xf32>
    %42 = arith.mulf %41, %10 : vector<8x256xf32>
    %c64 = arith.constant 64 : index
    %c0_40 = arith.constant 0 : index
    %43 = vector.load %arg7[%c64, %c0_40] : memref<72x512xf32, #tpu.memory_space<vmem>>, vector<8x256xf32>
    tpu.vector_store %arg7[%c64, %c0_40], %42 {strides = array<i32>} : memref<72x512xf32, #tpu.memory_space<vmem>>, vector<8x256xf32>,
    %c1_41 = arith.constant 1 : index
    %c0_42 = arith.constant 0 : index
    %c111_43 = arith.constant 111 : index
    %44 = vector.load %arg6[%c1_41, %c0_42, %c111_43] : memref<2x8x512xf32, #tpu.memory_space<vmem>>, vector<1x8x256xf32>
    %45 = vector.shape_cast %44 : vector<1x8x256xf32> to vector<8x256xf32>
    %46 = arith.mulf %45, %7 : vector<8x256xf32>
    %c0_44 = arith.constant 0 : index
    %c256 = arith.constant 256 : index
    %47 = vector.load %arg7[%c0_44, %c256] : memref<72x512xf32, #tpu.memory_space<vmem>>, vector<8x256xf32>
    tpu.vector_store %arg7[%c0_44, %c256], %46 {strides = array<i32>} : memref<72x512xf32, #tpu.memory_space<vmem>>, vector<8x256xf32>,
    %c1_45 = arith.constant 1 : index
    %c0_46 = arith.constant 0 : index
    %c112_47 = arith.constant 112 : index
    %48 = vector.load %arg6[%c1_45, %c0_46, %c112_47] : memref<2x8x512xf32, #tpu.memory_space<vmem>>, vector<1x8x256xf32>
    %49 = vector.shape_cast %48 : vector<1x8x256xf32> to vector<8x256xf32>
    %c8_48 = arith.constant 8 : index
    %c256_49 = arith.constant 256 : index
    %50 = vector.load %arg7[%c8_48, %c256_49] : memref<72x512xf32, #tpu.memory_space<vmem>>, vector<8x256xf32>
    tpu.vector_store %arg7[%c8_48, %c256_49], %49 {strides = array<i32>} : memref<72x512xf32, #tpu.memory_space<vmem>>, vector<8x256xf32>,
    %c1_50 = arith.constant 1 : index
    %c0_51 = arith.constant 0 : index
    %c113_52 = arith.constant 113 : index
    %51 = vector.load %arg6[%c1_50, %c0_51, %c113_52] : memref<2x8x512xf32, #tpu.memory_space<vmem>>, vector<1x8x256xf32>
    %52 = vector.shape_cast %51 : vector<1x8x256xf32> to vector<8x256xf32>
    %53 = arith.mulf %52, %10 : vector<8x256xf32>
    %c16_53 = arith.constant 16 : index
    %c256_54 = arith.constant 256 : index
    %54 = vector.load %arg7[%c16_53, %c256_54] : memref<72x512xf32, #tpu.memory_space<vmem>>, vector<8x256xf32>
    tpu.vector_store %arg7[%c16_53, %c256_54], %53 {strides = array<i32>} : memref<72x512xf32, #tpu.memory_space<vmem>>, vector<8x256xf32>,
    %c1_55 = arith.constant 1 : index
    %c0_56 = arith.constant 0 : index
    %c127_57 = arith.constant 127 : index
    %55 = vector.load %arg6[%c1_55, %c0_56, %c127_57] : memref<2x8x512xf32, #tpu.memory_space<vmem>>, vector<1x8x256xf32>
    %56 = vector.shape_cast %55 : vector<1x8x256xf32> to vector<8x256xf32>
    %57 = arith.mulf %56, %7 : vector<8x256xf32>
    %c24_58 = arith.constant 24 : index
    %c256_59 = arith.constant 256 : index
    %58 = vector.load %arg7[%c24_58, %c256_59] : memref<72x512xf32, #tpu.memory_space<vmem>>, vector<8x256xf32>
    tpu.vector_store %arg7[%c24_58, %c256_59], %57 {strides = array<i32>} : memref<72x512xf32, #tpu.memory_space<vmem>>, vector<8x256xf32>,
    %c1_60 = arith.constant 1 : index
    %c0_61 = arith.constant 0 : index
    %c128_62 = arith.constant 128 : index
    %59 = vector.load %arg6[%c1_60, %c0_61, %c128_62] : memref<2x8x512xf32, #tpu.memory_space<vmem>>, vector<1x8x256xf32>
    %60 = vector.shape_cast %59 : vector<1x8x256xf32> to vector<8x256xf32>
    %c32_63 = arith.constant 32 : index
    %c256_64 = arith.constant 256 : index
    %61 = vector.load %arg7[%c32_63, %c256_64] : memref<72x512xf32, #tpu.memory_space<vmem>>, vector<8x256xf32>
    tpu.vector_store %arg7[%c32_63, %c256_64], %60 {strides = array<i32>} : memref<72x512xf32, #tpu.memory_space<vmem>>, vector<8x256xf32>,
    %c1_65 = arith.constant 1 : index
    %c0_66 = arith.constant 0 : index
    %c129_67 = arith.constant 129 : index
    %62 = vector.load %arg6[%c1_65, %c0_66, %c129_67] : memref<2x8x512xf32, #tpu.memory_space<vmem>>, vector<1x8x256xf32>
    %63 = vector.shape_cast %62 : vector<1x8x256xf32> to vector<8x256xf32>
    %64 = arith.mulf %63, %10 : vector<8x256xf32>
    %c40_68 = arith.constant 40 : index
    %c256_69 = arith.constant 256 : index
    %65 = vector.load %arg7[%c40_68, %c256_69] : memref<72x512xf32, #tpu.memory_space<vmem>>, vector<8x256xf32>
    tpu.vector_store %arg7[%c40_68, %c256_69], %64 {strides = array<i32>} : memref<72x512xf32, #tpu.memory_space<vmem>>, vector<8x256xf32>,
    %c1_70 = arith.constant 1 : index
    %c0_71 = arith.constant 0 : index
    %c143_72 = arith.constant 143 : index
    %66 = vector.load %arg6[%c1_70, %c0_71, %c143_72] : memref<2x8x512xf32, #tpu.memory_space<vmem>>, vector<1x8x256xf32>
    %67 = vector.shape_cast %66 : vector<1x8x256xf32> to vector<8x256xf32>
    %68 = arith.mulf %67, %7 : vector<8x256xf32>
    %c48_73 = arith.constant 48 : index
    %c256_74 = arith.constant 256 : index
    %69 = vector.load %arg7[%c48_73, %c256_74] : memref<72x512xf32, #tpu.memory_space<vmem>>, vector<8x256xf32>
    tpu.vector_store %arg7[%c48_73, %c256_74], %68 {strides = array<i32>} : memref<72x512xf32, #tpu.memory_space<vmem>>, vector<8x256xf32>,
    %c1_75 = arith.constant 1 : index
    %c0_76 = arith.constant 0 : index
    %c144_77 = arith.constant 144 : index
    %70 = vector.load %arg6[%c1_75, %c0_76, %c144_77] : memref<2x8x512xf32, #tpu.memory_space<vmem>>, vector<1x8x256xf32>
    %71 = vector.shape_cast %70 : vector<1x8x256xf32> to vector<8x256xf32>
    %c56_78 = arith.constant 56 : index
    %c256_79 = arith.constant 256 : index
    %72 = vector.load %arg7[%c56_78, %c256_79] : memref<72x512xf32, #tpu.memory_space<vmem>>, vector<8x256xf32>
    tpu.vector_store %arg7[%c56_78, %c256_79], %71 {strides = array<i32>} : memref<72x512xf32, #tpu.memory_space<vmem>>, vector<8x256xf32>,
    %c1_80 = arith.constant 1 : index
    %c0_81 = arith.constant 0 : index
    %c145_82 = arith.constant 145 : index
    %73 = vector.load %arg6[%c1_80, %c0_81, %c145_82] : memref<2x8x512xf32, #tpu.memory_space<vmem>>, vector<1x8x256xf32>
    %74 = vector.shape_cast %73 : vector<1x8x256xf32> to vector<8x256xf32>
    %75 = arith.mulf %74, %10 : vector<8x256xf32>
    %c64_83 = arith.constant 64 : index
    %c256_84 = arith.constant 256 : index
    %76 = vector.load %arg7[%c64_83, %c256_84] : memref<72x512xf32, #tpu.memory_space<vmem>>, vector<8x256xf32>
    tpu.vector_store %arg7[%c64_83, %c256_84], %75 {strides = array<i32>} : memref<72x512xf32, #tpu.memory_space<vmem>>, vector<8x256xf32>,
    %c0_85 = arith.constant 0 : index
    %c0_86 = arith.constant 0 : index
    %77 = vector.load %arg2[%c0_85, %c0_86] : memref<8x72xf32, #tpu.memory_space<vmem>>, vector<8x72xf32>
    %c0_87 = arith.constant 0 : index
    %c0_88 = arith.constant 0 : index
    %78 = vector.load %arg7[%c0_87, %c0_88] : memref<72x512xf32, #tpu.memory_space<vmem>>, vector<72x512xf32>
    %cst_89 = arith.constant dense<0.000000e+00> : vector<8x512xf32>
    %79 = tpu.matmul %77, %78, %cst_89 {dimension_numbers = #tpu.dot_dimension_numbers<[1], [0], [0], [1], [0, 0, 1, 1], [], []>} : vector<8x72xf32>, vector<72x512xf32>, vector<8x512xf32> -> vector<8x512xf32>
    %80 = vector.extract_strided_slice %79 {offsets = [0, 0], sizes = [8, 256], strides = [1, 1]} : vector<8x512xf32> to vector<8x256xf32>
    %c0_90 = arith.constant 0 : index
    %c0_91 = arith.constant 0 : index
    %c0_92 = arith.constant 0 : index
    %81 = vector.load %arg4[%c0_90, %c0_91, %c0_92] : memref<2x8x256xf32, #tpu.memory_space<vmem>>, vector<1x8x256xf32>
    %82 = vector.shape_cast %81 : vector<1x8x256xf32> to vector<8x256xf32>
    %83 = vector.shape_cast %80 : vector<8x256xf32> to vector<1x8x256xf32>
    tpu.vector_store %arg4[%c0_90, %c0_91, %c0_92], %83 {strides = array<i32>} : memref<2x8x256xf32, #tpu.memory_space<vmem>>, vector<1x8x256xf32>,
    %84 = vector.extract_strided_slice %79 {offsets = [0, 256], sizes = [8, 256], strides = [1, 1]} : vector<8x512xf32> to vector<8x256xf32>
    %c1_93 = arith.constant 1 : index
    %c0_94 = arith.constant 0 : index
    %c0_95 = arith.constant 0 : index
    %85 = vector.load %arg4[%c1_93, %c0_94, %c0_95] : memref<2x8x256xf32, #tpu.memory_space<vmem>>, vector<1x8x256xf32>
    %86 = vector.shape_cast %85 : vector<1x8x256xf32> to vector<8x256xf32>
    %87 = vector.shape_cast %84 : vector<8x256xf32> to vector<1x8x256xf32>
    tpu.vector_store %arg4[%c1_93, %c0_94, %c0_95], %87 {strides = array<i32>} : memref<2x8x256xf32, #tpu.memory_space<vmem>>, vector<1x8x256xf32>,
    %cst_96 = arith.constant dense<0.000000e+00> : vector<8xf32>
    %88 = vector.multi_reduction <add>, %79, %cst_96 [1] : vector<8x512xf32> to vector<8xf32>
    %89 = vector.shape_cast %88 : vector<8xf32> to vector<8x1xf32>
    %c0_97 = arith.constant 0 : index
    %c0_98 = arith.constant 0 : index
    %c0_99 = arith.constant 0 : index
    %90 = vector.load %arg5[%c0_97, %c0_98, %c0_99] : memref<1x8x2xf32, #tpu.memory_space<vmem>>, vector<1x8x1xf32>
    %91 = vector.shape_cast %90 : vector<1x8x1xf32> to vector<8x1xf32>
    %92 = vector.shape_cast %89 : vector<8x1xf32> to vector<1x8x1xf32>
    tpu.vector_store %arg5[%c0_97, %c0_98, %c0_99], %92 {strides = array<i32>} : memref<1x8x2xf32, #tpu.memory_space<vmem>>, vector<1x8x1xf32>,
    %93 = arith.mulf %79, %79 : vector<8x512xf32>
    %cst_100 = arith.constant dense<0.000000e+00> : vector<8xf32>
    %94 = vector.multi_reduction <add>, %93, %cst_100 [1] : vector<8x512xf32> to vector<8xf32>
    %95 = vector.shape_cast %94 : vector<8xf32> to vector<8x1xf32>
    %c0_101 = arith.constant 0 : index
    %c0_102 = arith.constant 0 : index
    %c1_103 = arith.constant 1 : index
    %96 = vector.load %arg5[%c0_101, %c0_102, %c1_103] : memref<1x8x2xf32, #tpu.memory_space<vmem>>, vector<1x8x1xf32>
    %97 = vector.shape_cast %96 : vector<1x8x1xf32> to vector<8x1xf32>
    %98 = vector.shape_cast %95 : vector<8x1xf32> to vector<1x8x1xf32>
    tpu.vector_store %arg5[%c0_101, %c0_102, %c1_103], %98 {strides = array<i32>} : memref<1x8x2xf32, #tpu.memory_space<vmem>>, vector<1x8x1xf32>,
    return
  }
  func.func @transform_0(%arg0: i32) -> (i32, i32, i32) {
    %c0_i32 = arith.constant 0 : i32
    %c0_i32_0 = arith.constant 0 : i32
    %c0_i32_1 = arith.constant 0 : i32
    return %arg0, %c0_i32, %c0_i32_0 : i32, i32, i32
  }
  func.func @transform_1(%arg0: i32) -> (i32, i32) {
    %c0_i32 = arith.constant 0 : i32
    %c0_i32_0 = arith.constant 0 : i32
    %c0_i32_1 = arith.constant 0 : i32
    return %c0_i32, %c0_i32_0 : i32, i32
  }
  func.func @transform_2(%arg0: i32) -> (i32, i32) {
    %c0_i32 = arith.constant 0 : i32
    %c0_i32_0 = arith.constant 0 : i32
    %c0_i32_1 = arith.constant 0 : i32
    return %c0_i32, %c0_i32_0 : i32, i32
  }
  func.func @transform_3(%arg0: i32) -> (i32, i32, i32) {
    %c0_i32 = arith.constant 0 : i32
    %c0_i32_0 = arith.constant 0 : i32
    %c0_i32_1 = arith.constant 0 : i32
    return %arg0, %c0_i32, %c0_i32_0 : i32, i32, i32
  }
  func.func @transform_4(%arg0: i32) -> (i32, i32, i32) {
    %c0_i32 = arith.constant 0 : i32
    %c0_i32_0 = arith.constant 0 : i32
    %c0_i32_1 = arith.constant 0 : i32
    return %arg0, %c0_i32, %c0_i32_0 : i32, i32, i32
  }
}

</mosaic_0001>

<bundles_post_ra>
// kernel: tpu_custom_call.1
= control target key start
LH: loop header
LB: loop body
LE: loop exit
PB: predicated region body
PF: predicated region fallthrough
CT: control target
= control target key end

     0   :  { %10 = vsyncpa [#allocation5], 0  ;;  %s1793_s0 = inlined_call_operand.hbm [shape: f32[4,8,256], index: 0, kind: input, shape index: {}]   ;;  %s1794_s1 = inlined_call_operand.hbm [shape: f32[8,72], index: 1, kind: input, shape index: {}]   ;;  %s1795_s2 = inlined_call_operand.vmem [shape: f32[2,256], index: 2, kind: input, shape index: {}]   ;;  %s1796_s3 = inlined_call_operand.hbm [shape: f32[4,8,256], index: 3, kind: output, shape index: {0}]   ;;  %s1797_s4 = inlined_call_operand.vmem [shape: f32[2,8,2], index: 4, kind: output, shape index: {1}]  }
   0x1   :  { %12 = vsyncpa [#allocation5 + $0x1], 0 }
   0x2   :  { %13 = vsyncpa [#allocation8], 0 }
   0x3   :  { %14 = vsyncpa [#allocation6], 0 }
   0x4   :  { %16 = vsyncpa [#allocation6 + $0x1], 0  ;;  %s1404_s15 = smov 0   ;;  %s1406_s16 = smov 0  }
   0x5   :  { %s1408_s17 = smov 0   ;;  %s1410_s18 = smov 0  }
   0x6 LB: > { %s1425_s19 = sadd.s32 4294967295, %s1362_s18   ;;  %s1000_s20 = sadd.s32 4294967294, %s1362_s18   ;;  %s1362_s18 = sphi %s1410_s18, %s1822_s18   ;;  %s1358_s17 = sphi %s1408_s17, %s1821_s17   ;;  %s1354_s16 = sphi %s1406_s16, %s1820_s16   ;;  %s1350_s15 = sphi %s1404_s15, %s1819_s15  }
   0x7   : > { %s1429_s21 = sadd.s32 1, %s1362_s18   ;;  %s29_s22 = sadd.s32 1, %s1358_s17 }
   0x8   : > { %s26_s23 = ssub.s32 %s1362_s18, %s1429_s21  ;;  %p36_p0 = scmp.ne.s32.totalorder %s1358_s17, %s1354_s16 }
   0x9   : > { %p27_p1 = scmp.eq.s32.totalorder %s26_s23, 0  ;;  %p37_p2 = scmp.eq.s32.totalorder %s1362_s18, 0 }
   0xa   : > { %p42_p3 = scmp.ne.s32.totalorder %s1354_s16, %s1350_s15  ;;  %p1798_p4 = scmp.eq.s32.totalorder %s1425_s19, 0 }
   0xb   : > { %s1441_s24 = scalar_select %p27_p1, %s1358_s17, %s29_s22  }
   0xc   : > { %p1443_p5 = por %p37_p2, %p36_p0  ;;  %p1449_p6 = por %p1798_p4, %p42_p3 }
   0xd   : > { %p108_p7 = scmp.eq.s32.totalorder %s1425_s19, 1  ;;  %p114_p8 = scmp.eq.s32.totalorder %s1000_s20, 1 }
   0xe   : > { %s1804_s26 = scalar_select %p1449_p6, 1, 0 }
   0xf   : > { %p1001_p9 = scmp.ge.s32.totalorder %s1362_s18, 1  ;;  %p147_p10 = scmp.lt.s32.totalorder %s1362_s18, 3 }
  0x10   : > { %p1456_p11 = por %p108_p7, %p36_p0  ;;  %p1460_p12 = por %p114_p8, %p42_p3 }
  0x11   : > { %p1464_p13 = pnand %p1001_p9, %p147_p10  ;;  %s1364_s30 = smov [#allocation7]  }
  0x12   : > { %s1805_s27 = scalar_select %p1456_p11, 1, 0 }
  0x13   : > { %s1806_s28 = scalar_select %p1460_p12, 1, 0 }
  0x14   : > { %s1807_s29 = scalar_select %p1464_p13, 1, 0 }
  0x15   : > { %p1068_p2 = pneg %p1464_p13  ;;  %s160_s5 = sshll.u32 %s1364_s30, 4  ;;  %s161_s5 = int_to_ptr.vmem [resolvable:$true] %s160_s5 }
  0x16   : > { %p1081_p4 = scmp.lt.s32.totalorder %s1362_s18, 2  ;;  %p1808_p0 = scmp.eq.s32.totalorder %s1425_s19, 0 }
  0x17   : > { %s174_s7 = sand.u32 1, %s1358_s17   ;;  %s1234_s12 = scalar_lea.hbm %s1794_s1, 128 }
  0x18   : > { %p1474_p7 = pnand %p1068_p2, %p1808_p0  ;;  %p1481_p3 = pnand %p1081_p4, %p1443_p5 }
  0x19   : > { %s1004_s9 = sshll.u32 %s174_s7, 5  ;;  %p1235_p8 = scmp.ne.s32.totalorder %s1794_s1, %s1234_s12 }
  0x1a   : > { %s1810_s8 = scalar_select %p1481_p3, 1, 0 }
  0x1b   : > { %p1236_p9 = pneg %p1474_p7  ;;  %p1241_p4 = scmp.lt.u32.totalorder %s1234_s12, %s1794_s1 }
  0x1d   : > { %p1237_p10 = pnand %p1236_p9, %p1235_p8 }
  0x1f   : > { %p1238_p2 = pneg %p1237_p10 }
  0x21   : > { %p1243_p5 = pnand %p1241_p4, %p1238_p2 }
  0x23   : > { %1246 = shalt.err (!%p1243_p5)
}
  0x24   : > { %s1247_s23 = scalar_lea.vmem %s161_s5, 128  ;;  %p1255_p11 = scmp.lt.s32.totalorder %s161_s5, %s161_s5 }
  0x25   : > { %p1248_p0 = scmp.ne.s32.totalorder %s161_s5, %s1247_s23  ;;  %p1256_p6 = scmp.lt.s32.totalorder %s1247_s23, %s1247_s23 }
  0x27   : > { %p1250_p1 = pnand %p1248_p0, %p1236_p9  ;;  %p1257_p13 = por %p1256_p6, %p1255_p11 }
  0x29   : > { %p1251_p12 = pneg %p1250_p1 }
  0x2b   : > { %p1258_p3 = pnand %p1257_p13, %p1251_p12 }
  0x2d   : > { %1261 = shalt.err (!%p1258_p3)
}
  0x2e   : > { %1071 = dma.hbm_to_vmem [thread:$0]  (!%p1474_p7), %s1794_s1, 128, %s161_s5, [#allocation8]  }
  0x2f   : > { %s1025_s10 = sshll.u32 %s1362_s18, 9  ;;  %s178_s11 = scalar_lea.vmem [#allocation4], %s1004_s9 }
  0x30   : > { %s186_s12 = sshll.u32 %s178_s11, 4  ;;  %s1505_s20 = scalar_lea.hbm %s1793_s0, %s1025_s10  ;;  %s1507_s12 = int_to_ptr.vmem [resolvable:$true] %s186_s12 }
  0x31   : > { %s1509_s6 = scalar_lea.sflag [#allocation5], %s174_s7  ;;  %s1262_s22 = scalar_lea.hbm %s1505_s20, 512 }
  0x32   : > { %p1263_p6 = scmp.ne.s32.totalorder %s1505_s20, %s1262_s22  ;;  %p1811_p11 = scmp.ne.s32.totalorder %s1810_s8, 0 }
  0x33   : > { %s1267_s23 = scalar_lea.hbm %s1793_s0, 1024  ;;  %p1268_p7 = scmp.lt.u32.totalorder %s1505_s20, %s1793_s0 }
  0x34   : > { %p1264_p12 = pneg %p1811_p11  ;;  %p1269_p3 = scmp.lt.u32.totalorder %s1267_s23, %s1262_s22 }
  0x35   : > { %p1271_p9 = scmp.lt.u32.totalorder %s1262_s22, %s1505_s20 }
  0x36   : > { %p1265_p13 = pnand %p1264_p12, %p1263_p6  ;;  %p1270_p8 = por %p1269_p3, %p1268_p7 }
  0x38   : > { %p1266_p1 = pneg %p1265_p13  ;;  %p1272_p10 = por %p1271_p9, %p1270_p8 }
  0x3a   : > { %p1273_p2 = pnand %p1272_p10, %p1266_p1 }
  0x3c   : > { %1276 = shalt.err (!%p1273_p2)
}
  0x3d   : > { %s1277_s7 = scalar_lea.vmem %s1507_s12, 512  ;;  %s1365_s10 = smov [#allocation4]  }
  0x3e   : > { %p1278_p4 = scmp.ne.s32.totalorder %s1507_s12, %s1277_s7  ;;  %s1282_s11 = sshll.u32 %s1365_s10, 4  ;;  %s1283_s11 = int_to_ptr.vmem [resolvable:$false] %s1282_s11 }
  0x3f   : > { %s1284_s13 = scalar_lea.vmem %s1283_s11, 1024  ;;  %p1285_p6 = scmp.lt.s32.totalorder %s1507_s12, %s1283_s11 }
  0x40   : > { %p1280_p5 = pnand %p1278_p4, %p1264_p12  ;;  %p1286_p13 = scmp.lt.s32.totalorder %s1284_s13, %s1277_s7 }
  0x42   : > { %p1281_p0 = pneg %p1280_p5  ;;  %p1287_p7 = por %p1286_p13, %p1285_p6 }
  0x44   : > { %p1288_p3 = pnand %p1287_p7, %p1281_p0 }
  0x46   : > { %1291 = shalt.err (!%p1288_p3)
}
  0x47   : > { %s1366_s14 = smov 256   ;;  %s1367_s22 = smov 16  }
  0x48   : > { %1075 = dma.hbm_to_vmem [thread:$0]  (!%p1811_p11), %s1505_s20, 512, %s1507_s12, %s1509_s6, %s1366_s14, %s1366_s14, %s1367_s22  }
  0x49   : > { %p1812_p12 = scmp.ne.s32.totalorder %s1807_s29, 0 }
  0x4a   : > { %s1540_s5 = sand.u32 (!%p1812_p12), 1, %s1354_s16   ;;  %p1813_p1 = scmp.ne.s32.totalorder (!%p1812_p12), %s1804_s26, 0 }
  0x4b   : > { %198 = sbr.rel (%p1812_p12) target bundleno = 742 (0x2e6), region = 32  ;;  %s1009_s9 = sshll.u32 (!%p1812_p12), %s1540_s5, 5 }
  0x4c   : > { %s201_s23 = scalar_lea.sflag (!%p1812_p12), [#allocation5], %s1540_s5  ;;  %s1546_s25 = scalar_lea.vmem (!%p1812_p12), [#allocation4], %s1009_s9 }
  0x52   : > { %1337 = dma.done.wait (%p1813_p1), %s201_s23, 512  }
  0x53   : > { %1339 = vsyncadd (%p1813_p1), %s201_s23, 4294966784  ;;  %p1814_p11 = scmp.eq.s32.totalorder %s1425_s19, 0 }
  0x55   : > { %1341 = dma.done.wait (%p1814_p11), [#allocation8], 128   ;;  %p1815_p8 = pmov %p1814_p11 }
  0x56   : > { %v259_v0 = vlaneseq  ;;  %vm243_vm0 = vcmask 1048440   ;;  %v1368_v1 = vmov 0.0   ;;  %vm246_vm1 = vcmask 138240   ;;  %v1013_v5 = vld [vmem:[%s1795_s2 + $0x1] ss:$2 sm:$0x3] }
  0x57   : > { %1343 = vsyncadd (%p1815_p8), [#allocation8], 4294967168  ;;  %244 = vst.msk [vmem:[#allocation2] sm:$0xff] %vm243_vm0, %v1368_v1  ;;  %771 = vmatprep.mubr.f32.mxu0 %v1368_v1  ;;  %842 = vmatprep.mubr.f32.mxu1 %v1368_v1  ;;  %v257_v6 = vld [vmem:[%s1795_s2] ss:$2 sm:$0x3] }
  0x58   : > { %245 = vst.msk [vmem:[#allocation2 + $0x20] sm:$0xff] %vm243_vm0, %v1368_v1  ;;  %v260_v2 = vshrl.u32 %v259_v0, 7  ;;  %v1565_v9 = vld [vmem:[%s1546_s25 + $0x8] sm:$0xff]  ;;  %v1568_v10 = vld [vmem:[%s1546_s25] sm:$0xff]  ;;  %v1571_v11 = vld [vmem:[%s1546_s25 + $0x10] sm:$0xff]  ;;  %s1369_s20 = smov 113  }
  0x59   : > { %247 = vst.msk [vmem:[#allocation2 + $0x18] sm:$0xff] %vm246_vm1, %v1368_v1  ;;  %248 = vst.msk [vmem:[#allocation2 + $0x38] sm:$0xff] %vm246_vm1, %v1368_v1  ;;  %s1370_s6 = smov 111   ;;  %v1576_v14 = vld [vmem:[%s1546_s25 + $0x18] sm:$0xff]  ;;  %s1371_s30 = smov 127   ;;  %v1129_v17 = vpack.i.bf16 %v1565_v9, %v1568_v10  ;;  %vm285_vm2 = vcmask 908288  }
  0x5a   : > { %v261_v3 = vsub.s32 0, %v260_v2  ;;  %v265_v4 = vsub.s32 1, %v260_v2  ;;  %s1372_s7 = smov 1   ;;  %s1373_s10 = smov 15   ;;  %v1149_v19 = vpack.i.bf16 %v1576_v14, %v1568_v10  ;;  %vm365_vm3 = vcmask 1039360  }
  0x5b   : > { %s1374_s11 = smov 17   ;;  %s1375_s13 = smov 112   ;;  %vm334_vm4 = vcmask 924672   ;;  %vm382_vm5 = vcmask 7168   ;;  %vm351_vm6 = vcmask 121856   ;;  %vm320_vm7 = vcmask 130048  }
  0x5c   : > { %v273_v7 = vrot.slane %v1013_v5, %v261_v3  ;;  %v262_v8 = vrot.slane %v257_v6, %v261_v3  ;;  %v277_v12 = vrot.slane %v1013_v5, %v265_v4  ;;  %v266_v13 = vrot.slane %v257_v6, %v265_v4  ;;  %s1376_s14 = smov 16   ;;  %s230_s22 = scalar_lea.vmem [#allocation9], %s1009_s9 }
  0x5d   : > { %vm463_vm8 = vcmask 916480   ;;  %vm703_vm9 = vcmask 588800   ;;  %s890_s9 = sshll.u32 %s230_s22, 4  ;;  %s1027_s23 = sshll.u32 %s1425_s19, 9  ;;  %s1736_s9 = int_to_ptr.vmem [resolvable:$true] %s890_s9 }
  0x5e   : > { %330 = vrot.lane.b32.xlu1 %v273_v7, %s1369_s20  ;;  %281 = vrot.lane.b32.xlu0 %v262_v8, %s1370_s6  ;;  %v1594_v18 = vld [vmem:[#allocation2] sm:$0xff]  ;;  %s1742_s29 = scalar_lea.hbm %s1796_s3, %s1027_s23  ;;  %s872_s8 = scalar_lea.sflag [#allocation6], %s1540_s5 }
  0x5f   : > { %v1134_v20 = vpack.i.bf16 %v1571_v11, %v1594_v18  ;;  %v539_v21 = vld [vmem:[#allocation2 + $0x20] sm:$0xff]  ;;  %s1292_s12 = scalar_lea.vmem %s1736_s9, 512  ;;  %p1816_p10 = scmp.ne.s32.totalorder %s1805_s27, 0 }
  0x60   : > { %v1586_v15 = vld [vmem:[#allocation2 + $0x18] sm:$0xff]  ;;  %v1139_v22 = vpack.i.bf16 %v539_v21, %v1576_v14  ;;  %p1293_p9 = scmp.ne.s32.totalorder %s1736_s9, %s1292_s12 }
  0x61   : > { %v1144_v16 = vpack.i.bf16 %v1586_v15, %v1565_v9  ;;  %v1609_v35 = vld [vmem:[#allocation2 + $0x38] sm:$0xff] }
  0x62   : > { %332 = vrot.lane.b32.xlu1 %v277_v12, %s1369_s20  ;;  %283 = vrot.lane.b32.xlu0 %v266_v13, %s1370_s6  ;;  %p1294_p2 = pnand %p1293_p9, %p1816_p10 }
  0x64   : > { %p1295_p4 = pneg %p1294_p2 }
  0x66   : > { %363 = vrot.lane.b32.xlu1 %v266_v13, %s1371_s30  ;;  %361 = vrot.lane.b32.xlu0 %v262_v8, %s1371_s30 }
  0x6a   : > { %398 = vrot.lane.b32.xlu1 %v277_v12, %s1372_s7  ;;  %396 = vrot.lane.b32.xlu0 %v273_v7, %s1372_s7 }
  0x6e   : > { %427 = vrot.lane.b32.xlu1 %v266_v13, %s1373_s10  ;;  %425 = vrot.lane.b32.xlu0 %v262_v8, %s1373_s10 }
  0x72   : > { %475 = vrot.lane.b32.xlu1 %v277_v12, %s1374_s11  ;;  %473 = vrot.lane.b32.xlu0 %v273_v7, %s1374_s11 }
  0x76   : > { %1145 = vrot.lane.b32.xlu0 %v1144_v16, %s1375_s13  ;;  %1130 = vrot.lane.b32.xlu1 %v1129_v17, %s1376_s14 }
  0x7a   : > { %1150 = vrot.lane.b32.xlu0 %v1149_v19, %s1375_s13  ;;  %1135 = vrot.lane.b32.xlu1 %v1134_v20, %s1376_s14 }
  0x7e   : > { %1140 = vrot.lane.b32.xlu1 %v1139_v22, %s1376_s14 }
  0xd0   : > { %v331_v23 = vpop.permute.xlu1 %330  ;;  %v282_v24 = vpop.permute.xlu0 %281 }
  0xd1   : > { %v503_v28 = vmul.f32 %v539_v21, %v282_v24  ;;  %v542_v36 = vmul.f32 %v539_v21, %v331_v23  ;;  %v290_v58 = vmul.f32 %v1594_v18, %v282_v24  ;;  %v339_v7 = vmul.f32 %v331_v23, %v1594_v18 }
  0xd4   : > { %v333_v25 = vpop.permute.xlu1 %332  ;;  %v284_v26 = vpop.permute.xlu0 %283 }
  0xd5   : > { %v505_v27 = vmul.f32 %v284_v26, %v1576_v14  ;;  %v544_v32 = vmul.f32 %v333_v25, %v1576_v14  ;;  %v286_v43 = vsel %vm285_vm2, %v282_v24, %v284_v26  ;;  %v292_v50 = vmul.f32 %v284_v26, %v1565_v9 }
  0xd6   : > { %v291_v49 = vmul.f32 %v286_v43, %v1568_v10  ;;  %v504_v55 = vmul.f32 %v286_v43, %v1571_v11  ;;  %v335_v57 = vsel %vm334_vm4, %v331_v23, %v333_v25  ;;  %v341_v63 = vmul.f32 %v333_v25, %v1565_v9 }
  0xd7   : > { %v1154_v34 = vpack.i.bf16 %v503_v28, %v505_v27  ;;  %v1159_v42 = vpack.i.bf16 %v542_v36, %v544_v32  ;;  %v340_v62 = vmul.f32 %v335_v57, %v1568_v10  ;;  %v543_v4 = vmul.f32 %v335_v57, %v1571_v11 }
  0xd8   : > { %v364_v29 = vpop.permute.xlu1 %363  ;;  %v362_v30 = vpop.permute.xlu0 %361  ;;  %v1179_v56 = vpack.i.bf16 %v292_v50, %v291_v49  ;;  %v1184_v0 = vpack.i.bf16 %v504_v55, %v290_v58  ;;  %v1214_v26 = vpack.i.bf16 %v1571_v11, %v1609_v35 }
  0xd9   : > { %v565_v31 = vmul.f32 %v364_v29, %v1576_v14  ;;  %v563_v33 = vmul.f32 %v539_v21, %v362_v30  ;;  %1155 = vrot.lane.b32.xlu0 %v1154_v34, %s1374_s11  ;;  %v366_v47 = vsel %vm365_vm3, %v362_v30, %v364_v29  ;;  %v372_v52 = vmul.f32 %v364_v29, %v1565_v9 }
  0xda   : > { %v371_v53 = vmul.f32 %v366_v47, %v1568_v10  ;;  %v370_v59 = vmul.f32 %v362_v30, %v1594_v18  ;;  %v564_v60 = vmul.f32 %v366_v47, %v1571_v11  ;;  %v1189_v5 = vpack.i.bf16 %v341_v63, %v340_v62 }
  0xdb   : > { %v1164_v39 = vpack.i.bf16 %v563_v33, %v565_v31  ;;  %v1199_v19 = vpack.i.bf16 %v543_v4, %v339_v7 }
  0xdc   : > { %v399_v37 = vpop.permute.xlu1 %398  ;;  %v397_v38 = vpop.permute.xlu0 %396  ;;  %v1194_v61 = vpack.i.bf16 %v372_v52, %v371_v53  ;;  %v1204_v2 = vpack.i.bf16 %v564_v60, %v370_v59 }
  0xdd   : > { %v590_v40 = vmul.f32 %v1609_v35, %v399_v37  ;;  %v588_v41 = vmul.f32 %v397_v38, %v1571_v11  ;;  %1165 = vrot.lane.b32.xlu1 %v1164_v39, %s1372_s7  ;;  %1160 = vrot.lane.b32.xlu0 %v1159_v42, %s1373_s10  ;;  %v400_v3 = vsel %vm382_vm5, %v397_v38, %v399_v37 }
  0xde   : > { %v404_v8 = vmul.f32 %v397_v38, %v1568_v10  ;;  %v589_v12 = vmul.f32 %v400_v3, %v1576_v14  ;;  %v406_v16 = vmul.f32 %v1586_v15, %v399_v37  ;;  %v405_v17 = vmul.f32 %v400_v3, %v1565_v9 }
  0xdf   : > { %v1169_v46 = vpack.i.bf16 %v588_v41, %v590_v40 }
  0xe0   : > { %v428_v44 = vpop.permute.xlu1 %427  ;;  %v426_v45 = vpop.permute.xlu0 %425  ;;  %v1219_v18 = vpack.i.bf16 %v589_v12, %v404_v8  ;;  %v1209_v22 = vpack.i.bf16 %v406_v16, %v405_v17 }
  0xe1   : > { %v611_v48 = vmul.f32 %v1609_v35, %v428_v44  ;;  %v609_v51 = vmul.f32 %v426_v45, %v1571_v11  ;;  %1170 = vrot.lane.b32.xlu0 %v1169_v46, %s1371_s30  ;;  %v429_v13 = vsel %vm351_vm6, %v426_v45, %v428_v44  ;;  %v435_v20 = vmul.f32 %v1586_v15, %v428_v44 }
  0xe2   : > { %v434_v21 = vmul.f32 %v429_v13, %v1565_v9  ;;  %v433_v23 = vmul.f32 %v426_v45, %v1568_v10  ;;  %v610_v24 = vmul.f32 %v429_v13, %v1576_v14 }
  0xe3   : > { %v1174_v54 = vpack.i.bf16 %v609_v51, %v611_v48 }
  0xe4   : > { %v474_v1 = vpop.permute.xlu0 %473  ;;  %v1224_v25 = vpack.i.bf16 %v435_v20, %v434_v21  ;;  %v476_v27 = vpop.permute.xlu1 %475  ;;  %v1229_v29 = vpack.i.bf16 %v610_v24, %v433_v23 }
  0xe5   : > { %1175 = vrot.lane.b32.xlu1 %v1174_v54, %s1369_s20  ;;  %1180 = vrot.lane.b32.xlu0 %v1179_v56, %s1374_s11  ;;  %v481_v6 = vmul.f32 %v474_v1, %v1568_v10  ;;  %v483_v28 = vmul.f32 %v476_v27, %v1586_v15  ;;  %v477_v30 = vsel %vm246_vm1, %v474_v1, %v476_v27 }
  0xe6   : > { %v482_v31 = vmul.f32 %v477_v30, %v1565_v9  ;;  %v649_v32 = vmul.f32 %v477_v30, %v1576_v14  ;;  %v650_v33 = vmul.f32 %v1609_v35, %v476_v27  ;;  %v648_v15 = vmul.f32 %v474_v1, %v1571_v11 }
  0xe8   : > { %v1671_v34 = vpop.permute.xlu0 %1145  ;;  %v1131_v36 = vpop.permute.xlu1 %1130 }
  0xe9   : > { %1195 = vrot.lane.b32.xlu1 %v1194_v61, %s1372_s7  ;;  %1185 = vrot.lane.b32.xlu0 %v1184_v0, %s1374_s11  ;;  %v1133_v44 = vunpack.i.h.bf16 %v1131_v36  ;;  %v1132_v45 = vunpack.i.l.bf16 %v1131_v36  ;;  %v1147_v24 = vunpack.i.l.bf16 %v1671_v34 }
  0xeb   : > { %v322_v54 = vsel %vm320_vm7, %v1132_v45, %v1133_v44 }
  0xec   : > { %v1673_v37 = vpop.permute.xlu0 %1150  ;;  %v1136_v38 = vpop.permute.xlu1 %1135 }
  0xed   : > { %1205 = vrot.lane.b32.xlu1 %v1204_v2, %s1372_s7  ;;  %1190 = vrot.lane.b32.xlu0 %v1189_v5, %s1373_s10  ;;  %v1138_v49 = vunpack.i.h.bf16 %v1136_v38  ;;  %v1137_v50 = vunpack.i.l.bf16 %v1136_v38 }
  0xef   : > { %v321_v63 = vsel %vm320_vm7, %v1137_v50, %v1132_v45 }
  0xf0   : > { %v1141_v40 = vpop.permute.xlu1 %1140 }
  0xf1   : > { %487 = vrot.lane.b32.xlu1 %v481_v6, %s1370_s6  ;;  %1200 = vrot.lane.b32.xlu0 %v1199_v19, %s1373_s10  ;;  %v1142_v51 = vunpack.i.l.bf16 %v1141_v40  ;;  %v1143_v55 = vunpack.i.h.bf16 %v1141_v40 }
  0xf3   : > { %v534_v0 = vsel %vm320_vm7, %v1138_v49, %v1142_v51  ;;  %v533_v12 = vsel %vm320_vm7, %v1143_v55, %v1138_v49 }
  0xf5   : > { %1220 = vrot.lane.b32.xlu1 %v1219_v18, %s1371_s30  ;;  %1210 = vrot.lane.b32.xlu0 %v1209_v22, %s1371_s30  ;;  %v1148_v18 = vunpack.i.h.bf16 %v1671_v34 }
  0xf9   : > { %1225 = vrot.lane.b32.xlu1 %v1224_v25, %s1369_s20  ;;  %1215 = vrot.lane.b32.xlu0 %v1214_v26, %s1375_s13 }
  0xfd   : > { %1230 = vrot.lane.b32.xlu1 %v1229_v29, %s1369_s20  ;;  %491 = vrot.lane.b32.xlu0 %v483_v28, %s1370_s6  ;;  %s1377_s20 = smov [#allocation9]  }
 0x101   : > { %489 = vrot.lane.b32.xlu1 %v482_v31, %s1370_s6  ;;  %656 = vrot.lane.b32.xlu0 %v649_v32, %s1370_s6 }
 0x105   : > { %658 = vrot.lane.b32.xlu1 %v650_v33, %s1370_s6  ;;  %654 = vrot.lane.b32.xlu0 %v648_v15, %s1370_s6  ;;  %s1296_s6 = sshll.u32 %s1377_s20, 4  ;;  %s1297_s6 = int_to_ptr.vmem [resolvable:$false] %s1296_s6 }
 0x106   : > { %s1298_s30 = scalar_lea.vmem %s1297_s6, 1024  ;;  %p1299_p5 = scmp.lt.s32.totalorder %s1736_s9, %s1297_s6 }
 0x107   : > { %p1300_p0 = scmp.lt.s32.totalorder %s1298_s30, %s1292_s12 }
 0x109   : > { %p1301_p6 = por %p1300_p0, %p1299_p5 }
 0x10b   : > { %p1302_p13 = pnand %p1301_p6, %p1295_p4 }
 0x14b   : > { %v1156_v39 = vpop.permute.xlu0 %1155 }
 0x14c   : > { %v1157_v58 = vunpack.i.l.bf16 %v1156_v39  ;;  %v1158_v61 = vunpack.i.h.bf16 %v1156_v39 }
 0x14f   : > { %v1675_v41 = vpop.permute.xlu0 %1160  ;;  %v1677_v42 = vpop.permute.xlu1 %1165 }
 0x150   : > { %v1168_v25 = vunpack.i.h.bf16 %v1677_v42  ;;  %v1167_v26 = vunpack.i.l.bf16 %v1677_v42  ;;  %v1163_v29 = vunpack.i.h.bf16 %v1675_v41  ;;  %v1162_v30 = vunpack.i.l.bf16 %v1675_v41 }
 0x153   : > { %v1679_v35 = vpop.permute.xlu0 %1170 }
 0x154   : > { %v1173_v33 = vunpack.i.h.bf16 %v1679_v35  ;;  %v1172_v15 = vunpack.i.l.bf16 %v1679_v35 }
 0x157   : > { %v1681_v43 = vpop.permute.xlu1 %1175  ;;  %v1181_v46 = vpop.permute.xlu0 %1180 }
 0x158   : > { %v1183_v47 = vunpack.i.h.bf16 %v1181_v46  ;;  %v1182_v48 = vunpack.i.l.bf16 %v1181_v46 }
 0x15a   : > { %v303_v53 = vsel %vm246_vm1, %v1182_v48, %v1183_v47 }
 0x15b   : > { %v1196_v52 = vpop.permute.xlu1 %1195  ;;  %v1186_v56 = vpop.permute.xlu0 %1185  ;;  %v1028_v57 = vpack.c.bf16 %v322_v54, %v303_v53 }
 0x15c   : > { %v1188_v59 = vunpack.i.h.bf16 %v1186_v56  ;;  %v1187_v60 = vunpack.i.l.bf16 %v1186_v56  ;;  %v1198_v1 = vunpack.i.h.bf16 %v1196_v52  ;;  %v1197_v2 = vunpack.i.l.bf16 %v1196_v52 }
 0x15d   : > { %1029 = vmatprep.subr.bf16.mxu0 %v1028_v57 }
 0x15e   : > { %v302_v3 = vsel %vm246_vm1, %v1187_v60, %v1182_v48  ;;  %v516_v4 = vsel %vm246_vm1, %v1188_v59, %v1157_v58  ;;  %v515_v8 = vsel %vm246_vm1, %v1158_v61, %v1188_v59  ;;  %v384_v23 = vsel %vm382_vm5, %v1197_v2, %v1198_v1 }
 0x15f   : > { %v1206_v62 = vpop.permute.xlu1 %1205  ;;  %v1191_v5 = vpop.permute.xlu0 %1190  ;;  %v1030_v6 = vpack.c.bf16 %v321_v63, %v302_v3  ;;  %v1044_v7 = vpack.c.bf16 %v534_v0, %v516_v4  ;;  %v1046_v17 = vpack.c.bf16 %v533_v12, %v515_v8  ;;  %v1152_v59 = vunpack.i.l.bf16 %v1673_v37 }
 0x160   : > { %v1193_v13 = vunpack.i.h.bf16 %v1191_v5  ;;  %v1192_v16 = vunpack.i.l.bf16 %v1191_v5  ;;  %v1208_v19 = vunpack.i.h.bf16 %v1206_v62  ;;  %v1207_v20 = vunpack.i.l.bf16 %v1206_v62 }
 0x161   : > { %1031 = vmatpush1.bf16.msra.mxu0 %v1030_v6  ;;  %1045 = vmatprep.subr.bf16.mxu1 %v1044_v7  ;;  %v1153_v3 = vunpack.i.h.bf16 %v1673_v37  ;;  %v1178_v6 = vunpack.i.h.bf16 %v1681_v43  ;;  %v464_v8 = vsel %vm463_vm8, %v1152_v59, %v1147_v24 }
 0x162   : > { %1047 = vmatpush1.bf16.msra.mxu1 %v1046_v17  ;;  %v353_v22 = vsel %vm351_vm6, %v1192_v16, %v1193_v13  ;;  %v383_v34 = vsel %vm382_vm5, %v1207_v20, %v1197_v2  ;;  %v576_v38 = vsel %vm382_vm5, %v1208_v19, %v1167_v26  ;;  %v575_v48 = vsel %vm382_vm5, %v1168_v25, %v1208_v19  ;;  %v666_v25 = vld [vmem:[#allocation7] sm:$0xff] }
 0x163   : > { %v1691_v21 = vpop.permute.xlu1 %487  ;;  %v1201_v27 = vpop.permute.xlu0 %1200  ;;  %v1032_v28 = vpack.c.bf16 %v384_v23, %v353_v22  ;;  %v465_v2 = vsel %vm463_vm8, %v1147_v24, %v1148_v18 }
 0x164   : > { %v1203_v31 = vunpack.i.h.bf16 %v1201_v27  ;;  %v1202_v32 = vunpack.i.l.bf16 %v1201_v27 }
 0x165   : > { %1033 = vmatprep.subr.bf16.mxu0 %v1032_v28 }
 0x166   : > { %v352_v42 = vsel %vm351_vm6, %v1202_v32, %v1192_v16  ;;  %v555_v44 = vsel %vm351_vm6, %v1203_v31, %v1162_v30  ;;  %v554_v47 = vsel %vm351_vm6, %v1163_v29, %v1203_v31 }
 0x167   : > { %v1221_v36 = vpop.permute.xlu1 %1220  ;;  %v1211_v45 = vpop.permute.xlu0 %1210  ;;  %v1034_v41 = vpack.c.bf16 %v383_v34, %v352_v42  ;;  %v1048_v46 = vpack.c.bf16 %v576_v38, %v555_v44  ;;  %v1050_v50 = vpack.c.bf16 %v575_v48, %v554_v47 }
 0x168   : > { %v1223_v39 = vunpack.i.h.bf16 %v1221_v36  ;;  %v1222_v40 = vunpack.i.l.bf16 %v1221_v36  ;;  %v1213_v35 = vunpack.i.h.bf16 %v1211_v45  ;;  %v1212_v49 = vunpack.i.l.bf16 %v1211_v45 }
 0x169   : > { %1035 = vmatpush1.bf16.msra.mxu0 %v1034_v41  ;;  %1049 = vmatprep.subr.bf16.mxu1 %v1048_v46 }
 0x16a   : > { %v601_v51 = vsel %vm365_vm3, %v1223_v39, %v1172_v15  ;;  %v600_v54 = vsel %vm365_vm3, %v1173_v33, %v1223_v39  ;;  %1051 = vmatpush1.bf16.msra.mxu1 %v1050_v50  ;;  %v417_v57 = vsel %vm365_vm3, %v1212_v49, %v1213_v35  ;;  %v416_v58 = vsel %vm365_vm3, %v1222_v40, %v1212_v49 }
 0x16b   : > { %v1226_v52 = vpop.permute.xlu1 %1225  ;;  %v1052_v53 = vpack.c.bf16 %v601_v51, %v1576_v14  ;;  %v1216_v60 = vpop.permute.xlu0 %1215  ;;  %v1036_v61 = vpack.c.bf16 %v417_v57, %v1565_v9  ;;  %v1038_v62 = vpack.c.bf16 %v416_v58, %v1568_v10  ;;  %v1054_v14 = vpack.c.bf16 %v600_v54, %v1571_v11 }
 0x16c   : > { %v1228_v55 = vunpack.i.h.bf16 %v1226_v52  ;;  %v1227_v56 = vunpack.i.l.bf16 %v1226_v52  ;;  %v1218_v63 = vunpack.i.h.bf16 %v1216_v60  ;;  %v1217_v0 = vunpack.i.l.bf16 %v1216_v60 }
 0x16d   : > { %1053 = vmatprep.subr.bf16.mxu1 %v1052_v53  ;;  %1037 = vmatprep.subr.bf16.mxu0 %v1036_v61  ;;  %v1177_v9 = vunpack.i.l.bf16 %v1681_v43 }
 0x16e   : > { %v446_v1 = vsel %vm334_vm4, %v1227_v56, %v1228_v55  ;;  %1039 = vmatpush1.bf16.msra.mxu0 %v1038_v62  ;;  %1055 = vmatpush1.bf16.msra.mxu1 %v1054_v14  ;;  %v640_v12 = vsel %vm463_vm8, %v1153_v3, %v1217_v0  ;;  %v639_v17 = vsel %vm463_vm8, %v1218_v63, %v1153_v3 }
 0x16f   : > { %v1231_v4 = vpop.permute.xlu1 %1230  ;;  %v1040_v5 = vpack.c.bf16 %v465_v2, %v446_v1  ;;  %v492_v11 = vpop.permute.xlu0 %491 }
 0x170   : > { %v1233_v10 = vunpack.i.h.bf16 %v1231_v4  ;;  %v1232_v7 = vunpack.i.l.bf16 %v1231_v4 }
 0x171   : > { %1041 = vmatprep.subr.bf16.mxu0 %v1040_v5 }
 0x172   : > { %v445_v13 = vsel %vm334_vm4, %v1232_v7, %v1227_v56  ;;  %v622_v37 = vsel %vm334_vm4, %v1233_v10, %v1177_v9  ;;  %v621_v16 = vsel %vm334_vm4, %v1178_v6, %v1233_v10 }
 0x173   : > { %v490_v19 = vpop.permute.xlu1 %489  ;;  %v1042_v43 = vpack.c.bf16 %v464_v8, %v445_v13  ;;  %v1056_v20 = vpack.c.bf16 %v640_v12, %v622_v37  ;;  %v1058_v18 = vpack.c.bf16 %v639_v17, %v621_v16  ;;  %v657_v23 = vpop.permute.xlu0 %656 }
 0x174   : > { %v494_v22 = vsel %vm285_vm2, %v490_v19, %v492_v11  ;;  %v493_v26 = vsel %vm285_vm2, %v1691_v21, %v490_v19 }
 0x175   : > { %1043 = vmatpush1.bf16.msra.mxu0 %v1042_v43  ;;  %1057 = vmatprep.subr.bf16.mxu1 %v1056_v20 }
 0x176   : > { %723 = vmatprep.subr.mxu0 %v494_v22  ;;  %1059 = vmatpush1.bf16.msra.mxu1 %v1058_v18 }
 0x177   : > { %v659_v24 = vpop.permute.xlu1 %658  ;;  %v655_v28 = vpop.permute.xlu0 %654 }
 0x178   : > { %v661_v27 = vsel %vm285_vm2, %v657_v23, %v659_v24  ;;  %v660_v29 = vsel %vm285_vm2, %v655_v28, %v657_v23 }
 0x179   : > { %724 = vmatpush1.msra.mxu0 %v493_v26  ;;  %794 = vmatprep.subr.mxu1 %v661_v27 }
 0x17a   : > { %1014 = vmatmul.mubr.msk.f32.vlgmr.msra.gmra.mrb[0].mxu0 %vm703_vm9, %v666_v25  ;;  %795 = vmatpush1.msra.mxu1 %v660_v29 }
 0x17b   : > { %1015 = vmatmul.mubr.msk.f32.vlgmr.msra.gmra.mrb[0].mxu1 %vm703_vm9, %v666_v25 }
 0x24d   : > { %v773_v30 = vpop.f32.mrb[0].mxu0 }
 0x24e   : > { %849 = vst [vmem:[%s230_s22] sm:$0xff] %v773_v30  ;;  %v860_v31 = vmul.f32 %v773_v30, %v773_v30  ;;  %v775_v32 = vpop.f32.mrb[1].mxu0  ;;  %v844_v21 = vpop.f32.mrb[0].mxu1 }
 0x24f   : > { %850 = vst [vmem:[%s230_s22 + $0x8] sm:$0xff] %v775_v32  ;;  %v854_v33 = vadd.f32 %v775_v32, %v773_v30  ;;  %v861_v15 = vmul.f32 %v775_v32, %v775_v32  ;;  %1016 = vst [vmem:[%s230_s22 + $0x10] sm:$0xff] %v844_v21  ;;  %v862_v36 = vmul.f32 %v844_v21, %v844_v21  ;;  %v846_v34 = vpop.f32.mrb[1].mxu1 }
 0x250   : > { %1017 = vst [vmem:[%s230_s22 + $0x18] sm:$0xff] %v846_v34  ;;  %v863_v40 = vmul.f32 %v846_v34, %v846_v34 }
 0x251   : > { %v864_v38 = vadd.f32 %v861_v15, %v860_v31  ;;  %v855_v39 = vadd.f32 %v854_v33, %v844_v21 }
 0x253   : > { %v856_v42 = vadd.f32 %v855_v39, %v846_v34  ;;  %v865_v44 = vadd.f32 %v864_v38, %v862_v36 }
 0x255   : > { %857 = vadd.xlane.f32.xlu1 %v856_v42  ;;  %v866_v45 = vadd.f32 %v865_v44, %v863_v40 }
 0x257   : > { %867 = vadd.xlane.f32.xlu0 %v866_v45 }
 0x258   : > { %1305 = shalt.err (!%p1302_p13)
}
 0x259   : > { %s1306_s7 = scalar_lea.hbm %s1742_s29, 512  ;;  %s1310_s13 = scalar_lea.hbm %s1796_s3, 1024 }
 0x25a   : > { %p1307_p7 = scmp.ne.s32.totalorder %s1742_s29, %s1306_s7  ;;  %p1311_p1 = scmp.lt.u32.totalorder %s1742_s29, %s1796_s3 }
 0x25b   : > { %p1312_p11 = scmp.lt.u32.totalorder %s1310_s13, %s1306_s7  ;;  %p1314_p9 = scmp.lt.u32.totalorder %s1306_s7, %s1742_s29 }
 0x25c   : > { %p1308_p3 = pnand %p1307_p7, %p1816_p10 }
 0x25d   : > { %p1313_p8 = por %p1312_p11, %p1311_p1 }
 0x25e   : > { %p1309_p12 = pneg %p1308_p3 }
 0x25f   : > { %p1315_p2 = por %p1314_p9, %p1313_p8 }
 0x261   : > { %p1316_p4 = pnand %p1315_p2, %p1309_p12 }
 0x263   : > { %1319 = shalt.err (!%p1316_p4)
}
 0x264   : > { %s1378_s25 = smov 256   ;;  %p239_p5 = scmp.lt.s32.totalorder %s1425_s19, 1  ;;  %vm869_vm10 = vcmask 15368  }
 0x265   : > { %1066 = dma.vmem_to_hbm [thread:$0]  (%p1816_p10), %s1736_s9, 512, %s1742_s29, %s872_s8, %s1378_s25, %s1378_s25, %s1376_s14  }
 0x266   : > { %s1824_s19 = smov (!%p239_p5, %s1425_s19), 1 }
 0x267   : > { %s1012_s26 = sshll.u32 %s1824_s19, 3 }
 0x268   : > { %s242_s6 = scalar_lea.vmem %s1797_s4, %s1012_s26 }
 0x2e2   : > { %v858_v41 = vpop.xlane.xlu1 %857 }
 0x2e3   : > { %859 = vst.msk [vmem:[%s242_s6] sm:$0xff] %vm382_vm5, %v858_v41 }
 0x2e4   : > { %v868_v46 = vpop.xlane.xlu0 %867 }
 0x2e5   : > { %870 = vst.msk [vmem:[%s242_s6] sm:$0xff] %vm869_vm10, %v868_v46 }
 0x2e6 PF: > { %s908_s27 = sand.u32 1, %s1350_s15   ;;  %p1817_p0 = scmp.ne.s32.totalorder %s1806_s28, 0 }
 0x2e7   : > { %p1818_p10 = scmp.ge.s32.totalorder %s1362_s18, 2  ;;  %s909_s5 = scalar_lea.sflag [#allocation6], %s908_s27 }
 0x2e9   : > { %p1077_p6 = pnand %p1818_p10, %p1817_p0 }
 0x2eb   : > { %1345 = dma.done.wait (!%p1077_p6), %s909_s5, 512  }
 0x2ec   : > { %1347 = vsyncadd (!%p1077_p6), %s909_s5, 4294966784  ;;  %p19_p13 = scmp.ge.s32.totalorder %s1429_s21, 4   ;;  %s1819_s15 = smov %s1354_s16 }
 0x2ed   : > { %s1820_s16 = smov %s1358_s17  ;;  %s1821_s17 = smov %s1441_s24 }
 0x2ee   : > { %s1822_s18 = smov %s1429_s21  ;;  %21 = sbr.rel (!%p19_p13) target bundleno = 6 (0x6), region = 96 }
 0x2f5   :  { %921 = vsyncpa [#allocation5], 1 }
 0x2f6   :  { %923 = vsyncpa [#allocation5 + $0x1], 1 }
 0x2f7   :  { %924 = vsyncpa [#allocation8], 1 }
 0x2f8   :  { %925 = vsyncpa [#allocation6], 1 }
 0x2f9   :  { %927 = vsyncpa [#allocation6 + $0x1], 1 }

</bundles_post_ra>
